<compile_context>
chip_gen: v7x
topology: tpu7x:2x2x1
jax: 0.10.0
libtpu: 0.0.40
codegen_flags: <defaults>
</compile_context>

<pallas_src>
import functools

import jax
import jax.numpy as jnp
from jax.experimental import pallas as pl
from jax.experimental.pallas import tpu as pltpu


# ----------------------------------------------------------------------------
# Pallas kernel: streamed time-sum + MLP epilogue
# ----------------------------------------------------------------------------
def _classifier_head_kernel(feats_ref, w1_ref, b1_ref, w2_ref, b2_ref,
                            out_ref, acc_ref, *, inv_t, t_total, t_tile):
    t_idx = pl.program_id(1)
    n_t = pl.num_programs(1)

    # Zero the accumulator at the start of each batch block's time loop.
    @pl.when(t_idx == 0)
    def _():
        acc_ref[...] = jnp.zeros_like(acc_ref)

    # Full (non-tail) tiles: native-dtype (bf16) tile in, f32 widening reduce.
    @pl.when(t_idx < n_t - 1)
    def _():
        acc_ref[...] += jnp.sum(feats_ref[...], axis=1, dtype=jnp.float32)

    # Final tile: mask the ragged tail (rows >= t_total are OOB-padded junk),
    # fold it into the sum, then run the 1/T scale + the two tiny Linears.
    @pl.when(t_idx == n_t - 1)
    def _():
        tile = feats_ref[...]
        if t_total % t_tile != 0:  # static: emit the mask only when T is ragged
            tail_start = (t_total // t_tile) * t_tile
            row = tail_start + jax.lax.broadcasted_iota(jnp.int32, tile.shape, 1)
            tile = jnp.where(row < t_total, tile, jnp.zeros_like(tile))
        acc_ref[...] += jnp.sum(tile, axis=1, dtype=jnp.float32)

        pooled = acc_ref[...] * inv_t                          # [b_tile, D] f32
        # MXU-native bf16 x bf16 dots, f32 accumulation; only the tiny pooled/h
        # activations get down-cast (weights stay bf16 end-to-end).
        h = jnp.dot(pooled.astype(w1_ref.dtype), w1_ref[...],
                    preferred_element_type=jnp.float32) + b1_ref[...]
        h = jnp.maximum(h, 0.0)
        # Dropout(0.3): identity in eval / inference mode.
        # TODO(synk): training-mode stochastic dropout (pltpu.prng_*) not implemented.
        logits = jnp.dot(h.astype(w2_ref.dtype), w2_ref[...],
                         preferred_element_type=jnp.float32) + b2_ref[...]
        out_ref[0] = logits.astype(out_ref.dtype)              # lane-dense store


# ----------------------------------------------------------------------------
# Tiling heuristics
# ----------------------------------------------------------------------------
def _round_up(x, m):
    return ((x + m - 1) // m) * m


def _pick_b_tile(b):
    """Batch rows per block: >=2 'parallel' blocks whenever B allows it
    (v7x shards the parallel axis over its 2 TensorCores); prefer 8-row tiles."""
    if b >= 16 and b % 8 == 0:
        return 8
    if b >= 2 and b % 2 == 0:
        return b // 2
    return b


def _pick_t_tile(t_total, bytes_per_t_row, sublane, target_bytes=8 * 1024 * 1024):
    """Largest sublane-multiple tile whose feats block is ~target_bytes."""
    cap = max(sublane,
              (target_bytes // max(bytes_per_t_row, 1)) // sublane * sublane)
    return min(cap, _round_up(t_total, sublane))


# ----------------------------------------------------------------------------
# Wrapper
# ----------------------------------------------------------------------------
def classifier_head(feats, w1, b1, w2, b2, *, t_tile=None,
                    stream_dtype=jnp.bfloat16):
    """feats: [B, T, D]. Returns logits [B, num_classes] f32.

    Mirrors: pooled = feats.mean(1); Linear(D,128) -> ReLU -> Dropout(eval)
    -> Linear(128, num_classes).
    """
    B, T, D = feats.shape
    hidden = w1.shape[1]
    num_classes = w2.shape[1]

    # Stream the one big HBM read in bf16 (accumulation stays f32). Ideally the
    # backbone already emits bf16 and this cast is a no-op.
    if stream_dtype is not None and feats.dtype != stream_dtype:
        feats = feats.astype(stream_dtype)
    itemsize = jnp.dtype(feats.dtype).itemsize
    sublane = {4: 8, 2: 16, 1: 32}.get(itemsize, 8)

    b_tile = _pick_b_tile(B)
    n_b = B // b_tile

    if t_tile is None:
        t_tile = _pick_t_tile(T, b_tile * D * itemsize, sublane)
    n_t = pl.cdiv(T, t_tile)  # ragged tail handled by in-kernel masking

    # Lane-dense output: pad the second Linear's output lanes to a multiple of
    # 128 (unmasked full-lane stores); slice back to num_classes afterwards.
    out_lanes = max(128, _round_up(num_classes, 128))
    w_dtype = jnp.bfloat16  # tiny resident weights, MXU-native on all gens
    w1c = w1.astype(w_dtype)
    w2p = jnp.zeros((hidden, out_lanes), w_dtype).at[:, :num_classes].set(
        w2.astype(w_dtype))
    b1r = b1.reshape(1, hidden).astype(jnp.float32)
    b2p = jnp.zeros((1, out_lanes), jnp.float32).at[:, :num_classes].set(
        b2.reshape(1, num_classes).astype(jnp.float32))

    # Rough VMEM budget (double-buffered feats + resident weights + output +
    # accumulator) -> explicit scoped-VMEM limit: above v5e's 16 MiB default,
    # comfortably under v7x's 64 MiB per-core budget.
    feats_blk = b_tile * t_tile * D * itemsize
    w_bytes = (D * hidden + hidden * out_lanes) * 2 + (hidden + out_lanes) * 4
    need = (2 * feats_blk + 2 * w_bytes + 2 * b_tile * out_lanes * 4
            + b_tile * D * 4)
    vmem_limit = int(min(48 << 20, max(32 << 20, need + (8 << 20))))

    cost = pl.CostEstimate(
        flops=B * T * D + 2 * B * D * hidden + 2 * B * hidden * out_lanes,
        transcendentals=0,
        bytes_accessed=B * T * D * itemsize + w_bytes + B * out_lanes * 4,
    )

    grid = (n_b, n_t)
    kernel = functools.partial(_classifier_head_kernel, inv_t=1.0 / T,
                               t_total=T, t_tile=t_tile)

    out3 = pl.pallas_call(
        kernel,
        out_shape=jax.ShapeDtypeStruct((n_b, b_tile, out_lanes), jnp.float32),
        grid_spec=pltpu.PrefetchScalarGridSpec(
            num_scalar_prefetch=0,
            grid=grid,
            in_specs=[
                # Streamed features: time (reduction) axis last in the grid.
                pl.BlockSpec((b_tile, t_tile, D), lambda b, t: (b, t, 0)),
                # Small resident weights / biases (constant index map -> no
                # re-fetch across grid steps).
                # TODO(synk): pipeline_mode=pl.Buffered(1) on these constant
                # inputs would drop their redundant second pipeline buffer.
                pl.BlockSpec((D, hidden), lambda b, t: (0, 0)),
                pl.BlockSpec((1, hidden), lambda b, t: (0, 0)),
                pl.BlockSpec((hidden, out_lanes), lambda b, t: (0, 0)),
                pl.BlockSpec((1, out_lanes), lambda b, t: (0, 0)),
            ],
            # 3-D output (blocks, rows, 128*k lanes): the batch tile fills the
            # last two (full) dims, so any b_tile (even < 8) is layout-legal
            # and the store stays lane-dense.
            out_specs=pl.BlockSpec((1, b_tile, out_lanes),
                                   lambda b, t: (b, 0, 0)),
            scratch_shapes=[pltpu.VMEM((b_tile, D), jnp.float32)],
        ),
        compiler_params=pltpu.CompilerParams(
            dimension_semantics=("parallel", "arbitrary"),
            vmem_limit_bytes=vmem_limit),
        cost_estimate=cost,
    )(feats, w1c, b1r, w2p, b2p)

    return out3.reshape(B, out_lanes)[:, :num_classes]


# ----------------------------------------------------------------------------
# Deterministic synthetic "WavLM" feature extractor (plain-JAX glue)
# ----------------------------------------------------------------------------
def wavlm_extract_features_stub(x, w_feat):
    # TODO(synk): the real frozen WavLM transformer backbone is an external
    # module (wavlm_model arg) and is not translated; this framed linear+tanh
    # stands in for extract_features(x)[0][-1] -> [B, T, D].  It emits bf16 so
    # the classifier head streams half the bytes (accumulation stays f32).
    b, l = x.shape
    frame_len, d = w_feat.shape
    t = l // frame_len
    frames = x.reshape(b, t, frame_len)
    return jnp.tanh(frames @ w_feat).astype(jnp.bfloat16)


# ----------------------------------------------------------------------------
# Full forward (mirrors WavLMBinaryClassifier.forward)
# ----------------------------------------------------------------------------
def wavlm_binary_classifier_forward(x, params, *, t_tile=None):
    feats = wavlm_extract_features_stub(x, params["w_feat"])   # no_grad backbone
    return classifier_head(feats, params["w1"], params["b1"],
                           params["w2"], params["b2"], t_tile=t_tile)


def _reference_forward(x, params):
    # Same bf16 features as the kernel path, f32 math everywhere else.
    feats = wavlm_extract_features_stub(x, params["w_feat"]).astype(jnp.float32)
    # NOTE: mirrors PyTorch exactly -- mean over the full time axis (no
    # padding mask, same as the original module).
    pooled = feats.mean(axis=1)
    h = jnp.maximum(pooled @ params["w1"] + params["b1"], 0.0)
    return h @ params["w2"] + params["b2"]


def init_params(key, frame_len, embedding_dim, hidden=128, num_classes=2):
    k0, k1, k2, k3, k4 = jax.random.split(key, 5)
    return {
        "w_feat": jax.random.normal(k0, (frame_len, embedding_dim), jnp.float32) * 0.1,
        "w1": jax.random.normal(k1, (embedding_dim, hidden), jnp.float32) * 0.05,
        "b1": jax.random.normal(k2, (1, hidden), jnp.float32) * 0.01,
        "w2": jax.random.normal(k3, (hidden, num_classes), jnp.float32) * 0.05,
        "b2": jax.random.normal(k4, (1, num_classes), jnp.float32) * 0.01,
    }


if __name__ == "__main__":
    B = 2               # batch
    T = 40              # time frames after "wavlm" (ragged: not a t_tile multiple)
    FRAME = 16          # samples per frame in the stub extractor
    D = 32              # embedding_dim
    L = T * FRAME       # raw audio length

    key = jax.random.PRNGKey(0)
    kx, kp = jax.random.split(key)
    x = jax.random.normal(kx, (B, L), jnp.float32)   # raw audio input
    params = init_params(kp, FRAME, D)

    # t_tile=16 -> 3 time-grid steps (last one ragged/masked) and 2 parallel
    # batch blocks, exercising the streamed accumulator + tail-mask paths.
    fwd = jax.jit(functools.partial(wavlm_binary_classifier_forward, t_tile=16))
    logits = fwd(x, params)
    jax.block_until_ready(logits)

    ref = _reference_forward(x, params)
    assert logits.shape == (B, 2) and logits.dtype == jnp.float32
    max_err = float(jnp.max(jnp.abs(logits - ref)))
    assert jnp.allclose(logits, ref, atol=2e-3, rtol=2e-3), max_err
    print("KERNEL_OK")
</pallas_src>

<mosaic_0001>
module attributes {stable_mosaic.version = 11 : i64} {
  func.func @_classifier_head_kernel(%arg0: i32, %arg1: i32, %arg2: memref<1x16x32xbf16, #tpu.memory_space<vmem>>, %arg3: memref<32x128xbf16, #tpu.memory_space<vmem>>, %arg4: memref<1x128xf32, #tpu.memory_space<vmem>>, %arg5: memref<128x128xbf16, #tpu.memory_space<vmem>>, %arg6: memref<1x128xf32, #tpu.memory_space<vmem>>, %arg7: memref<1x1x128xf32, #tpu.memory_space<vmem>>, %arg8: memref<1x32xf32, #tpu.memory_space<vmem>>) attributes {dimension_semantics = [#tpu.dimension_semantics<parallel>, #tpu.dimension_semantics<arbitrary>], iteration_bounds = array<i64: 2, 3>, scalar_prefetch = 0 : i64, scratch_operands = 1 : i64, tpu.core_type = #tpu.core_type<tc>, window_params = [{transform_indices = @transform_0, window_bounds = array<i64: 1, 16, 32>}, {pipeline_mode = #tpu.pipeline_mode<synchronous>, transform_indices = @transform_1, window_bounds = array<i64: 32, 128>}, {pipeline_mode = #tpu.pipeline_mode<synchronous>, transform_indices = @transform_2, window_bounds = array<i64: 1, 128>}, {pipeline_mode = #tpu.pipeline_mode<synchronous>, transform_indices = @transform_3, window_bounds = array<i64: 128, 128>}, {pipeline_mode = #tpu.pipeline_mode<synchronous>, transform_indices = @transform_4, window_bounds = array<i64: 1, 128>}, {transform_indices = @transform_5, window_bounds = array<i64: 1, 1, 128>}]} {
    %c0_i32 = arith.constant 0 : i32
    %0 = arith.cmpi eq, %arg1, %c0_i32 : i32
    %1 = arith.extui %0 : i1 to i32
    %c0_i32_0 = arith.constant 0 : i32
    %2 = arith.cmpi ne, %1, %c0_i32_0 : i32
    scf.if %2 {
      %cst = arith.constant 0.000000e+00 : f32
      %9 = vector.broadcast %cst : f32 to vector<1x32xf32>
      %c0 = arith.constant 0 : index
      %c0_4 = arith.constant 0 : index
      %10 = vector.load %arg8[%c0, %c0_4] : memref<1x32xf32, #tpu.memory_space<vmem>>, vector<1x32xf32>
      tpu.vector_store %arg8[%c0, %c0_4], %9 {strides = array<i32>} : memref<1x32xf32, #tpu.memory_space<vmem>>, vector<1x32xf32>,
    } else {
    }
    %c2_i32 = arith.constant 2 : i32
    %3 = arith.cmpi slt, %arg1, %c2_i32 : i32
    %4 = arith.extui %3 : i1 to i32
    %c0_i32_1 = arith.constant 0 : i32
    %5 = arith.cmpi ne, %4, %c0_i32_1 : i32
    scf.if %5 {
      %c0 = arith.constant 0 : index
      %c0_4 = arith.constant 0 : index
      %9 = vector.load %arg8[%c0, %c0_4] : memref<1x32xf32, #tpu.memory_space<vmem>>, vector<1x32xf32>
      %c0_5 = arith.constant 0 : index
      %c0_6 = arith.constant 0 : index
      %c0_7 = arith.constant 0 : index
      %10 = vector.load %arg2[%c0_5, %c0_6, %c0_7] : memref<1x16x32xbf16, #tpu.memory_space<vmem>>, vector<1x16x32xbf16>
      %11 = arith.extf %10 : vector<1x16x32xbf16> to vector<1x16x32xf32>
      %cst = arith.constant dense<0.000000e+00> : vector<1x32xf32>
      %12 = vector.multi_reduction <add>, %11, %cst [1] : vector<1x16x32xf32> to vector<1x32xf32>
      %13 = arith.addf %9, %12 : vector<1x32xf32>
      %c0_8 = arith.constant 0 : index
      %c0_9 = arith.constant 0 : index
      %14 = vector.load %arg8[%c0_8, %c0_9] : memref<1x32xf32, #tpu.memory_space<vmem>>, vector<1x32xf32>
      tpu.vector_store %arg8[%c0_8, %c0_9], %13 {strides = array<i32>} : memref<1x32xf32, #tpu.memory_space<vmem>>, vector<1x32xf32>,
    } else {
    }
    %c2_i32_2 = arith.constant 2 : i32
    %6 = arith.cmpi eq, %arg1, %c2_i32_2 : i32
    %7 = arith.extui %6 : i1 to i32
    %c0_i32_3 = arith.constant 0 : i32
    %8 = arith.cmpi ne, %7, %c0_i32_3 : i32
    scf.if %8 {
      %c0 = arith.constant 0 : index
      %c0_4 = arith.constant 0 : index
      %c0_5 = arith.constant 0 : index
      %9 = vector.load %arg2[%c0, %c0_4, %c0_5] : memref<1x16x32xbf16, #tpu.memory_space<vmem>>, vector<1x16x32xbf16>
      %10 = tpu.iota {dimensions = array<i32: 1>} : vector<1x16x32xi32>
      %c32_i32 = arith.constant 32 : i32
      %11 = vector.broadcast %c32_i32 : i32 to vector<1x16x32xi32>
      %12 = arith.addi %11, %10 : vector<1x16x32xi32>
      %c40_i32 = arith.constant 40 : i32
      %13 = vector.broadcast %c40_i32 : i32 to vector<1x16x32xi32>
      %14 = arith.cmpi slt, %12, %13 : vector<1x16x32xi32>
      %cst = arith.constant 0.000000e+00 : bf16
      %15 = vector.broadcast %cst : bf16 to vector<1x16x32xbf16>
      %16 = arith.select %14, %9, %15 : vector<1x16x32xi1>, vector<1x16x32xbf16>
      %c0_6 = arith.constant 0 : index
      %c0_7 = arith.constant 0 : index
      %17 = vector.load %arg8[%c0_6, %c0_7] : memref<1x32xf32, #tpu.memory_space<vmem>>, vector<1x32xf32>
      %18 = arith.extf %16 : vector<1x16x32xbf16> to vector<1x16x32xf32>
      %cst_8 = arith.constant dense<0.000000e+00> : vector<1x32xf32>
      %19 = vector.multi_reduction <add>, %18, %cst_8 [1] : vector<1x16x32xf32> to vector<1x32xf32>
      %20 = arith.addf %17, %19 : vector<1x32xf32>
      %c0_9 = arith.constant 0 : index
      %c0_10 = arith.constant 0 : index
      %21 = vector.load %arg8[%c0_9, %c0_10] : memref<1x32xf32, #tpu.memory_space<vmem>>, vector<1x32xf32>
      tpu.vector_store %arg8[%c0_9, %c0_10], %20 {strides = array<i32>} : memref<1x32xf32, #tpu.memory_space<vmem>>, vector<1x32xf32>,
      %c0_11 = arith.constant 0 : index
      %c0_12 = arith.constant 0 : index
      %22 = vector.load %arg8[%c0_11, %c0_12] : memref<1x32xf32, #tpu.memory_space<vmem>>, vector<1x32xf32>
      %cst_13 = arith.constant 2.500000e-02 : f32
      %23 = vector.broadcast %cst_13 : f32 to vector<1x32xf32>
      %24 = arith.mulf %22, %23 : vector<1x32xf32>
      %25 = arith.truncf %24 : vector<1x32xf32> to vector<1x32xbf16>
      %c0_14 = arith.constant 0 : index
      %c0_15 = arith.constant 0 : index
      %26 = vector.load %arg3[%c0_14, %c0_15] : memref<32x128xbf16, #tpu.memory_space<vmem>>, vector<32x128xbf16>
      %cst_16 = arith.constant dense<0.000000e+00> : vector<1x128xf32>
      %27 = tpu.matmul %25, %26, %cst_16 {dimension_numbers = #tpu.dot_dimension_numbers<[1], [0], [0], [1], [0, 0, 1, 1], [], []>} : vector<1x32xbf16>, vector<32x128xbf16>, vector<1x128xf32> -> vector<1x128xf32>
      %c0_17 = arith.constant 0 : index
      %c0_18 = arith.constant 0 : index
      %28 = vector.load %arg4[%c0_17, %c0_18] : memref<1x128xf32, #tpu.memory_space<vmem>>, vector<1x128xf32>
      %29 = arith.addf %27, %28 : vector<1x128xf32>
      %cst_19 = arith.constant 0.000000e+00 : f32
      %30 = vector.broadcast %cst_19 : f32 to vector<1x128xf32>
      %31 = arith.maximumf %29, %30 : vector<1x128xf32>
      %32 = arith.truncf %31 : vector<1x128xf32> to vector<1x128xbf16>
      %c0_20 = arith.constant 0 : index
      %c0_21 = arith.constant 0 : index
      %33 = vector.load %arg5[%c0_20, %c0_21] : memref<128x128xbf16, #tpu.memory_space<vmem>>, vector<128x128xbf16>
      %cst_22 = arith.constant dense<0.000000e+00> : vector<1x128xf32>
      %34 = tpu.matmul %32, %33, %cst_22 {dimension_numbers = #tpu.dot_dimension_numbers<[1], [0], [0], [1], [0, 0, 1, 1], [], []>} : vector<1x128xbf16>, vector<128x128xbf16>, vector<1x128xf32> -> vector<1x128xf32>
      %c0_23 = arith.constant 0 : index
      %c0_24 = arith.constant 0 : index
      %35 = vector.load %arg6[%c0_23, %c0_24] : memref<1x128xf32, #tpu.memory_space<vmem>>, vector<1x128xf32>
      %36 = arith.addf %34, %35 : vector<1x128xf32>
      %c0_25 = arith.constant 0 : index
      %c0_26 = arith.constant 0 : index
      %c0_27 = arith.constant 0 : index
      %37 = vector.load %arg7[%c0_25, %c0_26, %c0_27] : memref<1x1x128xf32, #tpu.memory_space<vmem>>, vector<1x1x128xf32>
      %38 = vector.shape_cast %37 : vector<1x1x128xf32> to vector<1x128xf32>
      %39 = vector.shape_cast %36 : vector<1x128xf32> to vector<1x1x128xf32>
      tpu.vector_store %arg7[%c0_25, %c0_26, %c0_27], %39 {strides = array<i32>} : memref<1x1x128xf32, #tpu.memory_space<vmem>>, vector<1x1x128xf32>,
    } else {
    }
    return
  }
  func.func @transform_0(%arg0: i32, %arg1: i32) -> (i32, i32, i32) {
    %c0_i32 = arith.constant 0 : i32
    %c0_i32_0 = arith.constant 0 : i32
    return %arg0, %arg1, %c0_i32 : i32, i32, i32
  }
  func.func @transform_1(%arg0: i32, %arg1: i32) -> (i32, i32) {
    %c0_i32 = arith.constant 0 : i32
    %c0_i32_0 = arith.constant 0 : i32
    %c0_i32_1 = arith.constant 0 : i32
    return %c0_i32, %c0_i32_0 : i32, i32
  }
  func.func @transform_2(%arg0: i32, %arg1: i32) -> (i32, i32) {
    %c0_i32 = arith.constant 0 : i32
    %c0_i32_0 = arith.constant 0 : i32
    %c0_i32_1 = arith.constant 0 : i32
    return %c0_i32, %c0_i32_0 : i32, i32
  }
  func.func @transform_3(%arg0: i32, %arg1: i32) -> (i32, i32) {
    %c0_i32 = arith.constant 0 : i32
    %c0_i32_0 = arith.constant 0 : i32
    %c0_i32_1 = arith.constant 0 : i32
    return %c0_i32, %c0_i32_0 : i32, i32
  }
  func.func @transform_4(%arg0: i32, %arg1: i32) -> (i32, i32) {
    %c0_i32 = arith.constant 0 : i32
    %c0_i32_0 = arith.constant 0 : i32
    %c0_i32_1 = arith.constant 0 : i32
    return %c0_i32, %c0_i32_0 : i32, i32
  }
  func.func @transform_5(%arg0: i32, %arg1: i32) -> (i32, i32, i32) {
    %c0_i32 = arith.constant 0 : i32
    %c0_i32_0 = arith.constant 0 : i32
    %c0_i32_1 = arith.constant 0 : i32
    return %arg0, %c0_i32, %c0_i32_0 : i32, i32, i32
  }
}

</mosaic_0001>

<bundles_post_ra>
// kernel: wavlm_binary_classifier_forward.1
= control target key start
LH: loop header
LB: loop body
LE: loop exit
PB: predicated region body
PF: predicated region fallthrough
CT: control target
= control target key end

     0   :  { %10 = vsyncpa [#allocation4], 0  ;;  %s1055_s0 = inlined_call_operand.vmem [shape: bf16[2,40,32], index: 0, kind: input, shape index: {}]   ;;  %s1056_s1 = inlined_call_operand.vmem [shape: bf16[32,128], index: 1, kind: input, shape index: {}]   ;;  %s1057_s2 = inlined_call_operand.vmem [shape: f32[1,128], index: 2, kind: input, shape index: {}]   ;;  %s1058_s3 = inlined_call_operand.vmem [shape: bf16[128,128], index: 3, kind: input, shape index: {}]   ;;  %s1059_s4 = inlined_call_operand.vmem [shape: f32[1,128], index: 4, kind: input, shape index: {}]   ;;  %s1060_s5 = inlined_call_operand.hbm [shape: f32[2,1,128], index: 5, kind: output, shape index: {}]  }
   0x1   :  { %12 = vsyncpa [#allocation4 + $0x1], 0  ;;  %s873_s18 = smov 0   ;;  %s875_s19 = smov 0  }
   0x2   :  { %s877_s20 = smov 0   ;;  %s879_s21 = smov 0  }
   0x3   :  { %s881_s22 = smov 0   ;;  %s883_s23 = smov 0  }
   0x4   :  { %s885_s24 = smov 0   ;;  %s887_s25 = smov 0  }
   0x5 LB: > { %s588_s26 = sadd.s32 4294967295, %s836_s25   ;;  %s589_s27 = sadd.s32 4294967294, %s836_s25   ;;  %s836_s25 = sphi %s887_s25, %s18_s25   ;;  %s832_s24 = sphi %s885_s24, %s1069_s24   ;;  %s828_s23 = sphi %s883_s23, %s1068_s23   ;;  %s824_s22 = sphi %s881_s22, %s1067_s22   ;;  %s820_s21 = sphi %s879_s21, %s1066_s21   ;;  %s816_s20 = sphi %s877_s20, %s1065_s20   ;;  %s812_s19 = sphi %s875_s19, %s1064_s19   ;;  %s808_s18 = sphi %s873_s18, %s1063_s18  }
   0x6   : > { %s27_s28 = sadd.s32 1, %s828_s23  ;;  %s30_s29 = sadd.s32 1, %s832_s24 }
   0x7   : > { %p28_p0 = scmp.ge.s32.totalorder %s27_s28, 3  ;;  %p159_p1 = scmp.ne.s32.totalorder %s816_s20, %s812_s19 }
   0x8   : > { %p160_p2 = scmp.eq.s32.totalorder %s588_s26, 5  ;;  %p165_p4 = scmp.ne.s32.totalorder %s812_s19, %s808_s18 }
   0x9   : > { %s1071_s28 = smov (%p28_p0, %s27_s28), 0  ;;  %s1073_s29 = smov (!%p28_p0, %s30_s29), %s832_s24 }
   0xa   : > { %p922_p3 = por %p160_p2, %p159_p1  ;;  %p32_p5 = scmp.ge.s32.totalorder %s1073_s29, 2 }
   0xb   : > { %p166_p6 = scmp.eq.s32.totalorder %s589_s27, 5  ;;  %p592_p7 = scmp.ge.s32.totalorder %s836_s25, 1 }
   0xc   : > { %p217_p8 = scmp.lt.s32.totalorder %s836_s25, 7  ;;  %s1075_s29 = smov (%p32_p5, %s1073_s29), 0 }
   0xd   : > { %p932_p9 = por %p166_p6, %p165_p4  ;;  %s146_s7 = ssub.s32 %s832_s24, %s1075_s29 }
   0xe   : > { %p218_p10 = pnand %p592_p7, %p217_p8  ;;  %s149_s8 = sadd.s32 1, %s816_s20 }
   0xf   : > { %p147_p11 = scmp.eq.s32.totalorder %s146_s7, 0  ;;  %s250_s10 = sand.u32 (!%p218_p10), 1, %s812_s19  }
  0x10   : > { %221 = sbr.rel (%p218_p10) target bundleno = 546 (0x222), region = 40  ;;  %s593_s11 = sshll.u32 (!%p218_p10), %s820_s21, 1 }
  0x11   : > { %s940_s9 = scalar_select %p147_p11, %s816_s20, %s149_s8  }
  0x12   : > { %p257_p12 = scmp.lt.s32.totalorder (!%p218_p10), %s824_s22, 1  ;;  %p259_p13 = scmp.lt.s32.totalorder (!%p218_p10), %s593_s11, 4 }
  0x13   : > { %s953_s27 = scalar_lea.vmem (!%p218_p10), [#allocation3], %s250_s10  ;;  %p595_p0 = scmp.ne.s32.totalorder (!%p218_p10), %s820_s21, 0 }
  0x17   : > { %s258_s12 = scalar_select %p257_p12, %s824_s22, 1 }
  0x18   : > { %s1077_s11 = smov (!%p259_p13, %s593_s11), 4  ;;  %274 = sbr.rel (%p595_p0) target bundleno = 31 (0x1f), region = 44 }
  0x19   : > { %s656_s13 = smul.u32 5, %s258_s12  ;;  %vm275_vm0 = vcmask (!%p595_p0), 253952   ;;  %v838_v0 = vmov (!%p595_p0), 0.0  }
  0x1a   : > { %276 = vst.msk [vmem:[#allocation2] sm:$0x1] (!%p595_p0), %vm275_vm0, %v838_v0 }
  0x1b   : > { %s262_s14 = sadd.s32 %s656_s13, %s1077_s11 }
  0x1c   : > { %s594_s15 = sshll.u32 %s262_s14, 2 }
  0x1d   : > { %s949_s26 = scalar_lea.vmem %s1055_s0, %s594_s15 }
  0x1f PF: > { %p596_p1 = scmp.ge.s32.totalorder %s820_s21, 2 }
  0x20   : > { %v613_v1 = vld [vmem:[%s949_s26] sm:$0xff] (!%p596_p1)   ;;  %vm286_vm1 = vcmask (!%p596_p1), 261120   ;;  %vm297_vm2 = vcmask (!%p596_p1), 253952  }
  0x21   : > { %280 = sbr.rel (%p596_p1) target bundleno = 53 (0x35), region = 48  ;;  %v614_v2 = vunpack.c.l.bf16 (!%p596_p1), %v613_v1  ;;  %v615_v3 = vunpack.c.h.bf16 (!%p596_p1), %v613_v1  ;;  %v281_v12 = vld [vmem:[#allocation2] sm:$0x1] (!%p596_p1) }
  0x23   : > { %v287_v4 = vsel (!%p596_p1), %vm286_vm1, %v614_v2, 0.0  ;;  %v288_v5 = vsel (!%p596_p1), %vm286_vm1, %v615_v3, 0.0 }
  0x24   : > { %v289_v6 = vadd.f32 (!%p596_p1), %v288_v5, %v287_v4 }
  0x26   : > { %v290_v7 = vrot.slane (!%p596_p1), %v289_v6, 4 }
  0x28   : > { %v291_v8 = vadd.f32 %v290_v7, %v289_v6 }
  0x2a   : > { %v292_v9 = vrot.slane %v291_v8, 2 }
  0x2c   : > { %v293_v10 = vadd.f32 %v292_v9, %v291_v8 }
  0x2e   : > { %v294_v11 = vrot.slane %v293_v10, 1 }
  0x30   : > { %v295_v13 = vadd.f32 %v294_v11, %v293_v10 }
  0x32   : > { %v296_v14 = vadd.f32 %v295_v13, %v281_v12 }
  0x34   : > { %298 = vst.msk [vmem:[#allocation2] sm:$0x1] %vm297_vm2, %v296_v14 }
  0x35 PF: > { %p597_p2 = scmp.ne.s32.totalorder %s820_s21, 2 }
  0x36   : > { %v732_v15 = vld [vmem:[%s1056_s1] sm:$0xff] (!%p597_p2)   ;;  %v839_v16 = vmov (!%p597_p2), 0.0   ;;  %v733_v17 = vld [vmem:[%s1056_s1 + $0x8] sm:$0xff] (!%p597_p2)   ;;  %vm840_vm3 = vmmov (!%p597_p2), 0   ;;  %vm841_vm5 = vmmov (!%p597_p2), 1   ;;  %vm319_vm7 = vcmask (!%p597_p2), 261120  }
  0x37   : > { %302 = sbr.rel (%p597_p2) target bundleno = 522 (0x20a), region = 52  ;;  %628 = vmatprep.subr.bf16.mxu0 (!%p597_p2), %v839_v16  ;;  %636 = vmatprep.subr.bf16.mxu1 (!%p597_p2), %v839_v16  ;;  %v304_v18 = vld [vmem:[%s949_s26 + $0x4] sm:$0xf] (!%p597_p2)  ;;  %vm313_vm4 = vmpackc.low (!%p597_p2), %vm840_vm3, %vm840_vm3  ;;  %v303_v19 = vld [vmem:[%s949_s26] sm:$0xf] (!%p597_p2)  ;;  %vm330_vm8 = vcmask (!%p597_p2), 253952  }
  0x38   : > { %629 = vmatpush3.bf16.msra.mxu0 (!%p597_p2), %v732_v15  ;;  %632 = vmatprep.mubr.msk.bf16.mxu0 (!%p597_p2), %vm840_vm3, %v839_v16  ;;  %v315_v20 = vsel (!%p597_p2), %vm313_vm4, %v304_v18, 0  ;;  %vm312_vm6 = vmpackc.low (!%p597_p2), %vm841_vm5, %vm841_vm5  ;;  %v734_v23 = vld [vmem:[%s1058_s3] sm:$0xff] (!%p597_p2)   ;;  %v735_v26 = vld [vmem:[%s1058_s3 + $0x8] sm:$0xff] (!%p597_p2)  }
  0x39   : > { %630 = vmatprep.subr.bf16.mxu0 (!%p597_p2), %v839_v16  ;;  %652 = vmatprep.mubr.msk.bf16.mxu1 (!%p597_p2), %vm840_vm3, %v839_v16  ;;  %v318_v21 = vunpack.c.l.bf16 (!%p597_p2), %v315_v20  ;;  %v314_v22 = vsel (!%p597_p2), %vm312_vm6, %v303_v19, 0  ;;  %v736_v30 = vld [vmem:[%s1058_s3 + $0x10] sm:$0xff] (!%p597_p2)   ;;  %v737_v33 = vld [vmem:[%s1058_s3 + $0x18] sm:$0xff] (!%p597_p2)   ;;  %v738_v36 = vld [vmem:[%s1058_s3 + $0x20] sm:$0xff] (!%p597_p2)  }
  0x3a   : > { %v317_v24 = vunpack.c.l.bf16 (!%p597_p2), %v314_v22  ;;  %637 = vmatpush3.bf16.msra.mxu1 (!%p597_p2), %v734_v23  ;;  %v739_v40 = vld [vmem:[%s1058_s3 + $0x28] sm:$0xff] (!%p597_p2)   ;;  %v740_v44 = vld [vmem:[%s1058_s3 + $0x30] sm:$0xff] (!%p597_p2)   ;;  %v741_v45 = vld [vmem:[%s1058_s3 + $0x38] sm:$0xff] (!%p597_p2)  }
  0x3b   : > { %v321_v25 = vsel (!%p597_p2), %vm319_vm7, %v318_v21, 0.0  ;;  %638 = vmatprep.subr.bf16.mxu1 (!%p597_p2), %v839_v16  ;;  %v316_v37 = vld [vmem:[#allocation2] sm:$0x1] (!%p597_p2) }
  0x3c   : > { %631 = vmatpush3.bf16.msra.mxu0 (!%p597_p2), %v733_v17  ;;  %v320_v27 = vsel (!%p597_p2), %vm319_vm7, %v317_v24, 0.0  ;;  %v339_v46 = vld [vmem:[%s1057_s2] sm:$0x1] (!%p597_p2) }
  0x3d   : > { %v322_v28 = vadd.f32 (!%p597_p2), %v321_v25, %v320_v27  ;;  %v413_v54 = vld [vmem:[%s1059_s4] sm:$0x1] (!%p597_p2) }
  0x3e   : > { %639 = vmatpush3.bf16.msra.mxu1 %v735_v26 }
  0x3f   : > { %v323_v29 = vrot.slane %v322_v28, 4  ;;  %640 = vmatprep.subr.bf16.mxu1 %v839_v16 }
  0x41   : > { %v324_v31 = vadd.f32 %v323_v29, %v322_v28 }
  0x42   : > { %641 = vmatpush3.bf16.msra.mxu1 %v736_v30 }
  0x43   : > { %v325_v32 = vrot.slane %v324_v31, 2  ;;  %642 = vmatprep.subr.bf16.mxu1 %v839_v16 }
  0x45   : > { %v326_v34 = vadd.f32 %v325_v32, %v324_v31 }
  0x46   : > { %643 = vmatpush3.bf16.msra.mxu1 %v737_v33 }
  0x47   : > { %v327_v35 = vrot.slane %v326_v34, 1  ;;  %644 = vmatprep.subr.bf16.mxu1 %v839_v16 }
  0x49   : > { %v328_v38 = vadd.f32 %v327_v35, %v326_v34 }
  0x4a   : > { %645 = vmatpush3.bf16.msra.mxu1 %v738_v36 }
  0x4b   : > { %v329_v39 = vadd.f32 %v328_v38, %v316_v37  ;;  %646 = vmatprep.subr.bf16.mxu1 %v839_v16 }
  0x4d   : > { %331 = vst.msk [vmem:[#allocation2] sm:$0x1] %vm330_vm8, %v329_v39 }
  0x4e   : > { %647 = vmatpush3.bf16.msra.mxu1 %v739_v40 }
  0x4f   : > { %648 = vmatprep.subr.bf16.mxu1 %v839_v16 }
  0x52   : > { %649 = vmatpush3.bf16.msra.mxu1 %v740_v44 }
  0x53   : > { %650 = vmatprep.subr.bf16.mxu1 %v839_v16 }
  0x54   : > { %v332_v41 = vld [vmem:[#allocation2] sm:$0x1] }
  0x55   : > { %v333_v42 = vmul.f32 0.025, %v332_v41 }
  0x56   : > { %651 = vmatpush3.bf16.msra.mxu1 %v741_v45 }
  0x57   : > { %v334_v43 = vpack.c.bf16 %v333_v42, %v333_v42 }
  0x59   : > { %633 = vmatmul.mubr.msk.bf16.vlgmr.msra.gmra.mrb[0].mxu0 %vm319_vm7, %v334_v43 }
 0x12c   : > { %v389_v47 = vpop.f32.mrb[0].mxu0 }
 0x12d   : > { %v390_v48 = vadd.f32 %v389_v47, %v339_v46  ;;  %v634_v49 = vpop.f32.mrb[1].mxu0 }
 0x12e   : > { %v392_v50 = vpop.f32.mrb[2].mxu0 }
 0x12f   : > { %v395_v51 = vmax.f32 %v390_v48, 0.0  ;;  %v635_v52 = vpop.f32.mrb[3].mxu0 }
 0x131   : > { %v396_v53 = vpack.c.bf16 %v395_v51, %v395_v51 }
 0x133   : > { %653 = vmatmul.mubr.bf16.vlgmr.msra.gmra.mrb[0].mxu1 %v396_v53 }
 0x206   : > { %v496_v55 = vpop.f32.mrb[0].mxu1 }
 0x207   : > { %v497_v56 = vadd.f32 %v496_v55, %v413_v54  ;;  %v654_v57 = vpop.f32.mrb[1].mxu1 }
 0x208   : > { %v499_v58 = vpop.f32.mrb[2].mxu1 }
 0x209   : > { %502 = vst [vmem:[%s953_s27] sm:$0x1] %v497_v56  ;;  %v655_v59 = vpop.f32.mrb[3].mxu1 }
 0x20a PF: > { %s609_s11 = sshll.u32 %s824_s22, 4  ;;  %s516_s14 = sshll.u32 %s953_s27, 4  ;;  %s517_s14 = int_to_ptr.vmem [resolvable:$true] %s516_s14 }
 0x20b   : > { %s1005_s13 = scalar_lea.hbm %s1060_s5, %s609_s11  ;;  %s504_s15 = scalar_lea.sflag [#allocation4], %s250_s10 }
 0x20c   : > { %s742_s16 = scalar_lea.vmem %s517_s14, 16  ;;  %s842_s17 = smov [#allocation3]  }
 0x20d   : > { %p743_p4 = scmp.ne.s32.totalorder %s517_s14, %s742_s16  ;;  %s746_s26 = sshll.u32 %s842_s17, 4  ;;  %s747_s26 = int_to_ptr.vmem [resolvable:$false] %s746_s26 }
 0x20e   : > { %s748_s7 = scalar_lea.vmem %s747_s26, 32  ;;  %p749_p7 = scmp.lt.s32.totalorder %s517_s14, %s747_s26 }
 0x20f   : > { %p744_p5 = pnand %p743_p4, %p922_p3  ;;  %p750_p8 = scmp.lt.s32.totalorder %s748_s7, %s742_s16 }
 0x211   : > { %p745_p6 = pneg %p744_p5  ;;  %p751_p10 = por %p750_p8, %p749_p7 }
 0x213   : > { %p752_p11 = pnand %p751_p10, %p745_p6 }
 0x215   : > { %755 = shalt.err (!%p752_p11)
}
 0x216   : > { %s756_s22 = scalar_lea.hbm %s1005_s13, 16  ;;  %s760_s8 = scalar_lea.hbm %s1060_s5, 32 }
 0x217   : > { %p757_p12 = scmp.ne.s32.totalorder %s1005_s13, %s756_s22  ;;  %p761_p1 = scmp.lt.u32.totalorder %s1005_s13, %s1060_s5 }
 0x218   : > { %p762_p2 = scmp.lt.u32.totalorder %s760_s8, %s756_s22  ;;  %p764_p5 = scmp.lt.u32.totalorder %s756_s22, %s1005_s13 }
 0x219   : > { %p758_p13 = pnand %p757_p12, %p922_p3 }
 0x21a   : > { %p763_p4 = por %p762_p2, %p761_p1 }
 0x21b   : > { %p759_p0 = pneg %p758_p13 }
 0x21c   : > { %p765_p6 = por %p764_p5, %p763_p4 }
 0x21e   : > { %p766_p7 = pnand %p765_p6, %p759_p0 }
 0x220   : > { %769 = shalt.err (!%p766_p7)
}
 0x221   : > { %657 = dma.vmem_to_hbm [thread:$0]  (%p922_p3), %s517_s14, 16, %s1005_s13, %s504_s15  }
 0x222 PF: > { %p663_p8 = scmp.ge.s32.totalorder %s836_s25, 2  ;;  %s528_s21 = sand.u32 1, %s808_s18  }
 0x223   : > { %s529_s16 = scalar_lea.sflag [#allocation4], %s528_s21 }
 0x224   : > { %p660_p10 = pnand %p663_p8, %p932_p9 }
 0x226   : > { %803 = dma.done.wait (!%p660_p10), %s529_s16, 16  }
 0x227   : > { %805 = vsyncadd (!%p660_p10), %s529_s16, 4294967280  ;;  %s18_s25 = sadd.s32 1, %s836_s25   ;;  %s1063_s18 = smov %s812_s19 }
 0x228   : > { %p15_p11 = scmp.ge.s32.totalorder %s18_s25, 8   ;;  %s1064_s19 = smov %s816_s20 }
 0x229   : > { %s1065_s20 = smov %s940_s9  ;;  %s1066_s21 = smov %s828_s23 }
 0x22a   : > { %s1067_s22 = smov %s832_s24  ;;  %s1068_s23 = smov %s1071_s28 }
 0x22b   : > { %s1069_s24 = smov %s1075_s29  ;;  %17 = sbr.rel (!%p15_p11) target bundleno = 5 (0x5), region = 87 }
 0x232   :  { %533 = vsyncpa [#allocation4], 1 }
 0x233   :  { %535 = vsyncpa [#allocation4 + $0x1], 1 }

</bundles_post_ra>
